<compile_context>
chip_gen: v7x
topology: tpu7x:2x2x1
jax: 0.10.0
libtpu: 0.0.40
codegen_flags: <defaults>
</compile_context>

<pallas_src>
import functools

import numpy as np

import jax
import jax.numpy as jnp
from jax import lax
from jax.experimental import pallas as pl
from jax.experimental.pallas import tpu as pltpu

NUM_CLASSES = 8


# ----------------------------------------------------------------------------
# Pallas kernels
# ----------------------------------------------------------------------------
def _conv_s2d_kernel(x_ref, m_ref, b_ref, o_ref, *, ho):
    """One image: stride-2 3x3 conv + bias + ReLU as two banded matmuls.

    x_ref : (1, Hs, Ws*K)      space-to-depth input slab (bf16)
    m_ref : (2, Ws*K, Wo*Cout) packed banded weights (bf16), VMEM-resident
    b_ref : (1, Wo*Cout)       bias tiled per output column (f32)
    o_ref : (1, Ho, Wo*Cout)   lane-dense output
    """
    x = x_ref[0]
    acc = jnp.dot(x[0:ho, :], m_ref[0], preferred_element_type=jnp.float32)
    acc = acc + jnp.dot(x[1:ho + 1, :], m_ref[1],
                        preferred_element_type=jnp.float32)
    acc = jnp.maximum(acc + b_ref[...], 0.0)
    o_ref[0] = acc.astype(o_ref.dtype)


def conv3x3_s2(xs2d, m, b_row, ho, out_dtype):
    """Batched stride-2 3x3 conv; grid over images (acts as the M-tile)."""
    n, hs, wk = xs2d.shape
    wo_cout = m.shape[-1]
    return pl.pallas_call(
        functools.partial(_conv_s2d_kernel, ho=ho),
        out_shape=jax.ShapeDtypeStruct((n, ho, wo_cout), out_dtype),
        grid=(n,),
        in_specs=[
            pl.BlockSpec((1, hs, wk), lambda i: (i, 0, 0)),
            pl.BlockSpec(m.shape, lambda i: (0, 0, 0)),      # resident weights
            pl.BlockSpec(b_row.shape, lambda i: (0, 0)),     # resident bias
        ],
        out_specs=pl.BlockSpec((1, ho, wo_cout), lambda i: (i, 0, 0)),
        compiler_params=pltpu.CompilerParams(
            dimension_semantics=("parallel",)),
    )(xs2d, m, b_row)


def _decoder_kernel(x_ref, m_ref, b2_ref, w3_ref, b3_ref, ah_ref, awc_ref,
                    o_ref, *, ho2):
    """One image: conv2(3x3,s2)+ReLU -> 1x1 conv -> bilinear upsample, fused."""
    x = x_ref[0]                                               # (Hs2, Ws2*K2)
    acc = jnp.dot(x[0:ho2, :], m_ref[0], preferred_element_type=jnp.float32)
    acc = acc + jnp.dot(x[1:ho2 + 1, :], m_ref[1],
                        preferred_element_type=jnp.float32)
    y2 = jnp.maximum(acc + b2_ref[...], 0.0)                   # (Ho2, Wo2*32)
    # 1x1 conv -> class logits at feature resolution (block-diagonal weights,
    # lane index = wo * NUM_CLASSES + class).
    feat = jnp.dot(y2, w3_ref[...],
                   preferred_element_type=jnp.float32) + b3_ref[...]
    # Separable bilinear upsample over all classes at once.
    t = jnp.dot(ah_ref[...], feat, preferred_element_type=jnp.float32)
    out = jnp.dot(t, awc_ref[...], preferred_element_type=jnp.float32)
    o_ref[0] = out.astype(o_ref.dtype)                         # (Hout, Wout*NC)


def decoder_fused(xs2d, m2, b2_row, w3_blk, b3_row, ah, awc, ho2):
    n, hs2, wk2 = xs2d.shape
    h_out = ah.shape[0]
    w_out_nc = awc.shape[-1]
    return pl.pallas_call(
        functools.partial(_decoder_kernel, ho2=ho2),
        out_shape=jax.ShapeDtypeStruct((n, h_out, w_out_nc), jnp.float32),
        grid=(n,),
        in_specs=[
            pl.BlockSpec((1, hs2, wk2), lambda i: (i, 0, 0)),
            pl.BlockSpec(m2.shape, lambda i: (0, 0, 0)),
            pl.BlockSpec(b2_row.shape, lambda i: (0, 0)),
            pl.BlockSpec(w3_blk.shape, lambda i: (0, 0)),
            pl.BlockSpec(b3_row.shape, lambda i: (0, 0)),
            pl.BlockSpec(ah.shape, lambda i: (0, 0)),
            pl.BlockSpec(awc.shape, lambda i: (0, 0)),
        ],
        out_specs=pl.BlockSpec((1, h_out, w_out_nc), lambda i: (i, 0, 0)),
        compiler_params=pltpu.CompilerParams(
            dimension_semantics=("parallel",)),
    )(xs2d, m2, b2_row, w3_blk, b3_row, ah, awc)


# ----------------------------------------------------------------------------
# Host-side packing / layout helpers (run once at init / trace time)
# ----------------------------------------------------------------------------
def _conv_geom(h, w, pad=1):
    """Space-to-depth grid size (Hs, Ws) and conv output size (Ho, Wo)."""
    hp, wp = h + 2 * pad, w + 2 * pad
    hs, ws = (hp + hp % 2) // 2, (wp + wp % 2) // 2
    ho, wo = (hp - 3) // 2 + 1, (wp - 3) // 2 + 1
    return hs, ws, ho, wo


def _pad_s2d_flatten(x_nhwc, pad=1):
    """Pad + space-to-depth(2) an NHWC tensor, flattening (W,2,2,C) into the
    lane axis.  Same byte count as the padded input (no im2col inflation)."""
    n, h, w, c = x_nhwc.shape
    hs, ws, ho, wo = _conv_geom(h, w, pad)
    x = jnp.pad(x_nhwc, ((0, 0),
                         (pad, 2 * hs - h - pad),
                         (pad, 2 * ws - w - pad),
                         (0, 0)))
    x = x.reshape(n, hs, 2, ws, 2, c).transpose(0, 1, 3, 2, 4, 5)
    x = x.reshape(n, hs, ws * 4 * c)
    return x.astype(jnp.bfloat16), ho, wo


def _pack_conv3x3_s2(w, b, wo, ws):
    """Pack PyTorch-layout weights (Cout, Cin, 3, 3) into two banded matrices
    M[ai] of shape (Ws*4Cin, Wo*Cout) so that, on the space-to-depth input,
    conv(x)[ho] = sum_ai xs2d[ho+ai] @ M[ai]   (lane order of K = (di, dj, c))."""
    cout, cin, kh, kw = w.shape
    k = 4 * cin
    m = np.zeros((2, ws * k, wo * cout), np.float32)
    for ai in range(2):
        for di in range(2):
            ki = 2 * ai + di
            if ki >= kh:
                continue
            for aj in range(2):
                for dj in range(2):
                    kj = 2 * aj + dj
                    if kj >= kw:
                        continue
                    blk = np.asarray(w[:, :, ki, kj]).T        # (Cin, Cout)
                    for o in range(wo):
                        w_in = o + aj
                        if w_in >= ws:
                            continue
                        r0 = w_in * k + di * 2 * cin + dj * cin
                        m[ai, r0:r0 + cin, o * cout:(o + 1) * cout] += blk
    b_row = np.tile(np.asarray(b), wo)[None, :].astype(np.float32)
    return m, b_row


def _pack_conv1x1(w, b, wo):
    """Block-diagonal 1x1-conv weights for the (H, W*C) activation layout."""
    cout, cin = w.shape[:2]
    blk = np.asarray(w[:, :, 0, 0]).T                          # (Cin, Cout)
    m = np.zeros((wo * cin, wo * cout), np.float32)
    for o in range(wo):
        m[o * cin:(o + 1) * cin, o * cout:(o + 1) * cout] = blk
    b_row = np.tile(np.asarray(b), wo)[None, :].astype(np.float32)
    return m, b_row


def _bilinear_matrix(out_size, in_size):
    """1-D interpolation matrix matching torch F.interpolate(mode='bilinear',
    align_corners=False)."""
    scale = in_size / out_size
    o = np.arange(out_size, dtype=np.float64)
    src = np.maximum((o + 0.5) * scale - 0.5, 0.0)
    i0 = np.clip(np.floor(src).astype(np.int64), 0, in_size - 1)
    i1 = np.clip(i0 + 1, 0, in_size - 1)
    frac = src - i0
    a = np.zeros((out_size, in_size), np.float32)
    rows = np.arange(out_size)
    a[rows, i0] += (1.0 - frac).astype(np.float32)
    a[rows, i1] += frac.astype(np.float32)
    return a


def init_params(key, img_hw=(16, 16)):
    """Raw PyTorch-layout weights + MXU-packed (shape-specialized) versions."""
    h, w = img_hw
    k1, k2, k3, k4, k5, k6 = jax.random.split(key, 6)
    raw = dict(
        w1=jax.random.normal(k1, (16, 4, 3, 3), jnp.float32) * 0.1,
        b1=jax.random.normal(k4, (16,), jnp.float32) * 0.01,
        w2=jax.random.normal(k2, (32, 16, 3, 3), jnp.float32) * 0.1,
        b2=jax.random.normal(k5, (32,), jnp.float32) * 0.01,
        w3=jax.random.normal(k3, (NUM_CLASSES, 32, 1, 1), jnp.float32) * 0.1,
        b3=jax.random.normal(k6, (NUM_CLASSES,), jnp.float32) * 0.01,
    )
    _, ws1, ho1, wo1 = _conv_geom(h, w)
    _, ws2, ho2, wo2 = _conv_geom(ho1, wo1)
    m1, b1_row = _pack_conv3x3_s2(raw["w1"], raw["b1"], wo1, ws1)
    m2, b2_row = _pack_conv3x3_s2(raw["w2"], raw["b2"], wo2, ws2)
    w3_blk, b3_row = _pack_conv1x1(raw["w3"], raw["b3"], wo2)
    packed = dict(
        m1=jnp.asarray(m1, jnp.bfloat16), b1_row=jnp.asarray(b1_row),
        m2=jnp.asarray(m2, jnp.bfloat16), b2_row=jnp.asarray(b2_row),
        w3_blk=jnp.asarray(w3_blk), b3_row=jnp.asarray(b3_row),
    )
    return raw, packed


# ----------------------------------------------------------------------------
# Forward pass (== EncoderDecoder.forward)
# ----------------------------------------------------------------------------
def encoder_decoder_forward(img_nchw, packed):
    """logits = decoder(encoder(img), img.shape[2:]); NCHW in, NCHW out."""
    n, c, h, w = img_nchw.shape
    x = jnp.transpose(img_nchw, (0, 2, 3, 1))                  # NCHW -> NHWC

    # encoder conv1 (3x3, s2, p1) + ReLU -- im2col folded into banded weights.
    xs1, ho1, wo1 = _pad_s2d_flatten(x)
    y1 = conv3x3_s2(xs1, packed["m1"], packed["b1_row"], ho1, jnp.bfloat16)

    # encoder conv2 + decoder 1x1-conv + bilinear upsample -- ONE fused kernel.
    # TODO(synk): the pad+space-to-depth between the convs is still a (tiny)
    # XLA-side relayout of y1; folding it into the kernel as well would make
    # the whole net a single pallas_call.
    y1_img = y1.reshape(n, ho1, wo1, 16)
    xs2, ho2, wo2 = _pad_s2d_flatten(y1_img)
    ah = jnp.asarray(_bilinear_matrix(h, ho2))                          # (H, Ho2)
    awc = jnp.asarray(np.kron(_bilinear_matrix(w, wo2).T,
                              np.eye(NUM_CLASSES, dtype=np.float32)))   # (Wo2*NC, W*NC)
    out = decoder_fused(xs2, packed["m2"], packed["b2_row"],
                        packed["w3_blk"], packed["b3_row"], ah, awc, ho2)

    logits = out.reshape(n, h, w, NUM_CLASSES)
    return jnp.transpose(logits, (0, 3, 1, 2))                 # NHWC -> NCHW
    # TODO(synk): forward_train / auxiliary-head loss paths are training-only
    # framework plumbing (registry-built losses / acc_topk); only forward().


# ----------------------------------------------------------------------------
# Pure-JAX reference (f32) for a numerical cross-check
# ----------------------------------------------------------------------------
def reference_forward(img_nchw, raw, ah, aw):
    x = jnp.transpose(img_nchw, (0, 2, 3, 1)).astype(jnp.float32)
    dn = ("NHWC", "OIHW", "NHWC")
    y = lax.conv_general_dilated(x, raw["w1"], (2, 2), ((1, 1), (1, 1)),
                                 dimension_numbers=dn)
    y = jax.nn.relu(y + raw["b1"])
    y = lax.conv_general_dilated(y, raw["w2"], (2, 2), ((1, 1), (1, 1)),
                                 dimension_numbers=dn)
    y = jax.nn.relu(y + raw["b2"])
    y = jnp.einsum("nhwc,oc->nhwo", y, raw["w3"][:, :, 0, 0]) + raw["b3"]
    return jnp.einsum("ph,nhwc,qw->ncpq", ah, y, aw)


if __name__ == "__main__":
    key = jax.random.PRNGKey(0)
    pkey, xkey = jax.random.split(key)
    raw, packed = init_params(pkey, img_hw=(16, 16))
    img = jax.random.normal(xkey, (2, 4, 16, 16), jnp.float32)  # NCHW like PyTorch

    fwd = jax.jit(encoder_decoder_forward)
    logits = jax.block_until_ready(fwd(img, packed))

    assert logits.shape == (2, NUM_CLASSES, 16, 16), logits.shape
    assert bool(jnp.all(jnp.isfinite(logits)))

    # Cross-check against an f32 pure-JAX reference; the Pallas path uses bf16
    # activations/weights, so allow a loose absolute tolerance.
    _, _, ho1, wo1 = _conv_geom(16, 16)
    _, _, ho2, wo2 = _conv_geom(ho1, wo1)
    ref = reference_forward(img, raw,
                            jnp.asarray(_bilinear_matrix(16, ho2)),
                            jnp.asarray(_bilinear_matrix(16, wo2)))
    err = float(jnp.max(jnp.abs(logits - ref)))
    assert err < 1e-1, f"max |pallas - reference| = {err}"

    print("KERNEL_OK")
</pallas_src>

<mosaic_0001>
module attributes {stable_mosaic.version = 11 : i64} {
  func.func @_conv_s2d_kernel(%arg0: i32, %arg1: memref<1x9x144xbf16, #tpu.memory_space<vmem>>, %arg2: memref<2x144x128xbf16, #tpu.memory_space<vmem>>, %arg3: memref<1x128xf32, #tpu.memory_space<vmem>>, %arg4: memref<1x8x128xbf16, #tpu.memory_space<vmem>>) attributes {dimension_semantics = [#tpu.dimension_semantics<parallel>], iteration_bounds = array<i64: 2>, scalar_prefetch = 0 : i64, scratch_operands = 0 : i64, tpu.core_type = #tpu.core_type<tc>, window_params = [{transform_indices = @transform_0, window_bounds = array<i64: 1, 9, 144>}, {pipeline_mode = #tpu.pipeline_mode<synchronous>, transform_indices = @transform_1, window_bounds = array<i64: 2, 144, 128>}, {pipeline_mode = #tpu.pipeline_mode<synchronous>, transform_indices = @transform_2, window_bounds = array<i64: 1, 128>}, {transform_indices = @transform_3, window_bounds = array<i64: 1, 8, 128>}]} {
    %c0 = arith.constant 0 : index
    %c0_0 = arith.constant 0 : index
    %c0_1 = arith.constant 0 : index
    %0 = vector.load %arg1[%c0, %c0_0, %c0_1] : memref<1x9x144xbf16, #tpu.memory_space<vmem>>, vector<1x9x144xbf16>
    %1 = vector.shape_cast %0 : vector<1x9x144xbf16> to vector<9x144xbf16>
    %2 = vector.extract_strided_slice %1 {offsets = [0, 0], sizes = [8, 144], strides = [1, 1]} : vector<9x144xbf16> to vector<8x144xbf16>
    %c0_2 = arith.constant 0 : index
    %c0_3 = arith.constant 0 : index
    %c0_4 = arith.constant 0 : index
    %3 = vector.load %arg2[%c0_2, %c0_3, %c0_4] : memref<2x144x128xbf16, #tpu.memory_space<vmem>>, vector<1x144x128xbf16>
    %4 = vector.shape_cast %3 : vector<1x144x128xbf16> to vector<144x128xbf16>
    %cst = arith.constant dense<0.000000e+00> : vector<8x128xf32>
    %5 = tpu.matmul %2, %4, %cst {dimension_numbers = #tpu.dot_dimension_numbers<[1], [0], [0], [1], [0, 0, 1, 1], [], []>} : vector<8x144xbf16>, vector<144x128xbf16>, vector<8x128xf32> -> vector<8x128xf32>
    %6 = vector.extract_strided_slice %1 {offsets = [1, 0], sizes = [8, 144], strides = [1, 1]} : vector<9x144xbf16> to vector<8x144xbf16>
    %c1 = arith.constant 1 : index
    %c0_5 = arith.constant 0 : index
    %c0_6 = arith.constant 0 : index
    %7 = vector.load %arg2[%c1, %c0_5, %c0_6] : memref<2x144x128xbf16, #tpu.memory_space<vmem>>, vector<1x144x128xbf16>
    %8 = vector.shape_cast %7 : vector<1x144x128xbf16> to vector<144x128xbf16>
    %cst_7 = arith.constant dense<0.000000e+00> : vector<8x128xf32>
    %9 = tpu.matmul %6, %8, %cst_7 {dimension_numbers = #tpu.dot_dimension_numbers<[1], [0], [0], [1], [0, 0, 1, 1], [], []>} : vector<8x144xbf16>, vector<144x128xbf16>, vector<8x128xf32> -> vector<8x128xf32>
    %10 = arith.addf %5, %9 : vector<8x128xf32>
    %c0_8 = arith.constant 0 : index
    %c0_9 = arith.constant 0 : index
    %11 = vector.load %arg3[%c0_8, %c0_9] : memref<1x128xf32, #tpu.memory_space<vmem>>, vector<1x128xf32>
    %12 = vector.broadcast %11 : vector<1x128xf32> to vector<8x128xf32>
    %13 = arith.addf %10, %12 : vector<8x128xf32>
    %cst_10 = arith.constant 0.000000e+00 : f32
    %14 = vector.broadcast %cst_10 : f32 to vector<8x128xf32>
    %15 = arith.maximumf %13, %14 : vector<8x128xf32>
    %16 = arith.truncf %15 : vector<8x128xf32> to vector<8x128xbf16>
    %c0_11 = arith.constant 0 : index
    %c0_12 = arith.constant 0 : index
    %c0_13 = arith.constant 0 : index
    %17 = vector.load %arg4[%c0_11, %c0_12, %c0_13] : memref<1x8x128xbf16, #tpu.memory_space<vmem>>, vector<1x8x128xbf16>
    %18 = vector.shape_cast %17 : vector<1x8x128xbf16> to vector<8x128xbf16>
    %19 = vector.shape_cast %16 : vector<8x128xbf16> to vector<1x8x128xbf16>
    tpu.vector_store %arg4[%c0_11, %c0_12, %c0_13], %19 {strides = array<i32>} : memref<1x8x128xbf16, #tpu.memory_space<vmem>>, vector<1x8x128xbf16>,
    return
  }
  func.func @transform_0(%arg0: i32) -> (i32, i32, i32) {
    %c0_i32 = arith.constant 0 : i32
    %c0_i32_0 = arith.constant 0 : i32
    %c0_i32_1 = arith.constant 0 : i32
    return %arg0, %c0_i32, %c0_i32_0 : i32, i32, i32
  }
  func.func @transform_1(%arg0: i32) -> (i32, i32, i32) {
    %c0_i32 = arith.constant 0 : i32
    %c0_i32_0 = arith.constant 0 : i32
    %c0_i32_1 = arith.constant 0 : i32
    %c0_i32_2 = arith.constant 0 : i32
    return %c0_i32, %c0_i32_0, %c0_i32_1 : i32, i32, i32
  }
  func.func @transform_2(%arg0: i32) -> (i32, i32) {
    %c0_i32 = arith.constant 0 : i32
    %c0_i32_0 = arith.constant 0 : i32
    %c0_i32_1 = arith.constant 0 : i32
    return %c0_i32, %c0_i32_0 : i32, i32
  }
  func.func @transform_3(%arg0: i32) -> (i32, i32, i32) {
    %c0_i32 = arith.constant 0 : i32
    %c0_i32_0 = arith.constant 0 : i32
    %c0_i32_1 = arith.constant 0 : i32
    return %arg0, %c0_i32, %c0_i32_0 : i32, i32, i32
  }
}

module attributes {stable_mosaic.version = 11 : i64} {
  func.func @_decoder_kernel(%arg0: i32, %arg1: memref<1x5x320xbf16, #tpu.memory_space<vmem>>, %arg2: memref<2x320x128xbf16, #tpu.memory_space<vmem>>, %arg3: memref<1x128xf32, #tpu.memory_space<vmem>>, %arg4: memref<128x32xf32, #tpu.memory_space<vmem>>, %arg5: memref<1x32xf32, #tpu.memory_space<vmem>>, %arg6: memref<16x4xf32, #tpu.memory_space<vmem>>, %arg7: memref<32x128xf32, #tpu.memory_space<vmem>>, %arg8: memref<1x16x128xf32, #tpu.memory_space<vmem>>) attributes {dimension_semantics = [#tpu.dimension_semantics<parallel>], iteration_bounds = array<i64: 2>, scalar_prefetch = 0 : i64, scratch_operands = 0 : i64, tpu.core_type = #tpu.core_type<tc>, window_params = [{transform_indices = @transform_0, window_bounds = array<i64: 1, 5, 320>}, {pipeline_mode = #tpu.pipeline_mode<synchronous>, transform_indices = @transform_1, window_bounds = array<i64: 2, 320, 128>}, {pipeline_mode = #tpu.pipeline_mode<synchronous>, transform_indices = @transform_2, window_bounds = array<i64: 1, 128>}, {pipeline_mode = #tpu.pipeline_mode<synchronous>, transform_indices = @transform_3, window_bounds = array<i64: 128, 32>}, {pipeline_mode = #tpu.pipeline_mode<synchronous>, transform_indices = @transform_4, window_bounds = array<i64: 1, 32>}, {pipeline_mode = #tpu.pipeline_mode<synchronous>, transform_indices = @transform_5, window_bounds = array<i64: 16, 4>}, {pipeline_mode = #tpu.pipeline_mode<synchronous>, transform_indices = @transform_6, window_bounds = array<i64: 32, 128>}, {transform_indices = @transform_7, window_bounds = array<i64: 1, 16, 128>}]} {
    %c0 = arith.constant 0 : index
    %c0_0 = arith.constant 0 : index
    %c0_1 = arith.constant 0 : index
    %0 = vector.load %arg1[%c0, %c0_0, %c0_1] : memref<1x5x320xbf16, #tpu.memory_space<vmem>>, vector<1x5x320xbf16>
    %1 = vector.shape_cast %0 : vector<1x5x320xbf16> to vector<5x320xbf16>
    %2 = vector.extract_strided_slice %1 {offsets = [0, 0], sizes = [4, 320], strides = [1, 1]} : vector<5x320xbf16> to vector<4x320xbf16>
    %c0_2 = arith.constant 0 : index
    %c0_3 = arith.constant 0 : index
    %c0_4 = arith.constant 0 : index
    %3 = vector.load %arg2[%c0_2, %c0_3, %c0_4] : memref<2x320x128xbf16, #tpu.memory_space<vmem>>, vector<1x320x128xbf16>
    %4 = vector.shape_cast %3 : vector<1x320x128xbf16> to vector<320x128xbf16>
    %cst = arith.constant dense<0.000000e+00> : vector<4x128xf32>
    %5 = tpu.matmul %2, %4, %cst {dimension_numbers = #tpu.dot_dimension_numbers<[1], [0], [0], [1], [0, 0, 1, 1], [], []>} : vector<4x320xbf16>, vector<320x128xbf16>, vector<4x128xf32> -> vector<4x128xf32>
    %6 = vector.extract_strided_slice %1 {offsets = [1, 0], sizes = [4, 320], strides = [1, 1]} : vector<5x320xbf16> to vector<4x320xbf16>
    %c1 = arith.constant 1 : index
    %c0_5 = arith.constant 0 : index
    %c0_6 = arith.constant 0 : index
    %7 = vector.load %arg2[%c1, %c0_5, %c0_6] : memref<2x320x128xbf16, #tpu.memory_space<vmem>>, vector<1x320x128xbf16>
    %8 = vector.shape_cast %7 : vector<1x320x128xbf16> to vector<320x128xbf16>
    %cst_7 = arith.constant dense<0.000000e+00> : vector<4x128xf32>
    %9 = tpu.matmul %6, %8, %cst_7 {dimension_numbers = #tpu.dot_dimension_numbers<[1], [0], [0], [1], [0, 0, 1, 1], [], []>} : vector<4x320xbf16>, vector<320x128xbf16>, vector<4x128xf32> -> vector<4x128xf32>
    %10 = arith.addf %5, %9 : vector<4x128xf32>
    %c0_8 = arith.constant 0 : index
    %c0_9 = arith.constant 0 : index
    %11 = vector.load %arg3[%c0_8, %c0_9] : memref<1x128xf32, #tpu.memory_space<vmem>>, vector<1x128xf32>
    %12 = vector.broadcast %11 : vector<1x128xf32> to vector<4x128xf32>
    %13 = arith.addf %10, %12 : vector<4x128xf32>
    %cst_10 = arith.constant 0.000000e+00 : f32
    %14 = vector.broadcast %cst_10 : f32 to vector<4x128xf32>
    %15 = arith.maximumf %13, %14 : vector<4x128xf32>
    %c0_11 = arith.constant 0 : index
    %c0_12 = arith.constant 0 : index
    %16 = vector.load %arg4[%c0_11, %c0_12] : memref<128x32xf32, #tpu.memory_space<vmem>>, vector<128x32xf32>
    %cst_13 = arith.constant dense<0.000000e+00> : vector<4x32xf32>
    %17 = tpu.matmul %15, %16, %cst_13 {dimension_numbers = #tpu.dot_dimension_numbers<[1], [0], [0], [1], [0, 0, 1, 1], [], []>} : vector<4x128xf32>, vector<128x32xf32>, vector<4x32xf32> -> vector<4x32xf32>
    %c0_14 = arith.constant 0 : index
    %c0_15 = arith.constant 0 : index
    %18 = vector.load %arg5[%c0_14, %c0_15] : memref<1x32xf32, #tpu.memory_space<vmem>>, vector<1x32xf32>
    %19 = vector.broadcast %18 : vector<1x32xf32> to vector<4x32xf32>
    %20 = arith.addf %17, %19 : vector<4x32xf32>
    %c0_16 = arith.constant 0 : index
    %c0_17 = arith.constant 0 : index
    %21 = vector.load %arg6[%c0_16, %c0_17] : memref<16x4xf32, #tpu.memory_space<vmem>>, vector<16x4xf32>
    %cst_18 = arith.constant dense<0.000000e+00> : vector<16x32xf32>
    %22 = tpu.matmul %21, %20, %cst_18 {dimension_numbers = #tpu.dot_dimension_numbers<[1], [0], [0], [1], [0, 0, 1, 1], [], []>} : vector<16x4xf32>, vector<4x32xf32>, vector<16x32xf32> -> vector<16x32xf32>
    %c0_19 = arith.constant 0 : index
    %c0_20 = arith.constant 0 : index
    %23 = vector.load %arg7[%c0_19, %c0_20] : memref<32x128xf32, #tpu.memory_space<vmem>>, vector<32x128xf32>
    %cst_21 = arith.constant dense<0.000000e+00> : vector<16x128xf32>
    %24 = tpu.matmul %22, %23, %cst_21 {dimension_numbers = #tpu.dot_dimension_numbers<[1], [0], [0], [1], [0, 0, 1, 1], [], []>} : vector<16x32xf32>, vector<32x128xf32>, vector<16x128xf32> -> vector<16x128xf32>
    %c0_22 = arith.constant 0 : index
    %c0_23 = arith.constant 0 : index
    %c0_24 = arith.constant 0 : index
    %25 = vector.load %arg8[%c0_22, %c0_23, %c0_24] : memref<1x16x128xf32, #tpu.memory_space<vmem>>, vector<1x16x128xf32>
    %26 = vector.shape_cast %25 : vector<1x16x128xf32> to vector<16x128xf32>
    %27 = vector.shape_cast %24 : vector<16x128xf32> to vector<1x16x128xf32>
    tpu.vector_store %arg8[%c0_22, %c0_23, %c0_24], %27 {strides = array<i32>} : memref<1x16x128xf32, #tpu.memory_space<vmem>>, vector<1x16x128xf32>,
    return
  }
  func.func @transform_0(%arg0: i32) -> (i32, i32, i32) {
    %c0_i32 = arith.constant 0 : i32
    %c0_i32_0 = arith.constant 0 : i32
    %c0_i32_1 = arith.constant 0 : i32
    return %arg0, %c0_i32, %c0_i32_0 : i32, i32, i32
  }
  func.func @transform_1(%arg0: i32) -> (i32, i32, i32) {
    %c0_i32 = arith.constant 0 : i32
    %c0_i32_0 = arith.constant 0 : i32
    %c0_i32_1 = arith.constant 0 : i32
    %c0_i32_2 = arith.constant 0 : i32
    return %c0_i32, %c0_i32_0, %c0_i32_1 : i32, i32, i32
  }
  func.func @transform_2(%arg0: i32) -> (i32, i32) {
    %c0_i32 = arith.constant 0 : i32
    %c0_i32_0 = arith.constant 0 : i32
    %c0_i32_1 = arith.constant 0 : i32
    return %c0_i32, %c0_i32_0 : i32, i32
  }
  func.func @transform_3(%arg0: i32) -> (i32, i32) {
    %c0_i32 = arith.constant 0 : i32
    %c0_i32_0 = arith.constant 0 : i32
    %c0_i32_1 = arith.constant 0 : i32
    return %c0_i32, %c0_i32_0 : i32, i32
  }
  func.func @transform_4(%arg0: i32) -> (i32, i32) {
    %c0_i32 = arith.constant 0 : i32
    %c0_i32_0 = arith.constant 0 : i32
    %c0_i32_1 = arith.constant 0 : i32
    return %c0_i32, %c0_i32_0 : i32, i32
  }
  func.func @transform_5(%arg0: i32) -> (i32, i32) {
    %c0_i32 = arith.constant 0 : i32
    %c0_i32_0 = arith.constant 0 : i32
    %c0_i32_1 = arith.constant 0 : i32
    return %c0_i32, %c0_i32_0 : i32, i32
  }
  func.func @transform_6(%arg0: i32) -> (i32, i32) {
    %c0_i32 = arith.constant 0 : i32
    %c0_i32_0 = arith.constant 0 : i32
    %c0_i32_1 = arith.constant 0 : i32
    return %c0_i32, %c0_i32_0 : i32, i32
  }
  func.func @transform_7(%arg0: i32) -> (i32, i32, i32) {
    %c0_i32 = arith.constant 0 : i32
    %c0_i32_0 = arith.constant 0 : i32
    %c0_i32_1 = arith.constant 0 : i32
    return %arg0, %c0_i32, %c0_i32_0 : i32, i32, i32
  }
}

</mosaic_0001>

<bundles_post_ra>
// kernel: encoder_decoder_forward.2
= control target key start
LH: loop header
LB: loop body
LE: loop exit
PB: predicated region body
PF: predicated region fallthrough
CT: control target
= control target key end

     0   :  { %s608_s12 = smov 0   ;;  %s706_s0 = inlined_call_operand.vmem [shape: bf16[2,9,144], index: 0, kind: input, shape index: {}]   ;;  %s707_s1 = inlined_call_operand.vmem [shape: bf16[2,144,128], index: 1, kind: input, shape index: {}]   ;;  %s708_s2 = inlined_call_operand.vmem [shape: f32[1,128], index: 2, kind: input, shape index: {}]   ;;  %s709_s3 = inlined_call_operand.vmem [shape: bf16[2,8,128], index: 3, kind: output, shape index: {}]  }
   0x1 LB: > { %s494_s13 = sadd.s32 4294967295, %s585_s12   ;;  %p498_p0 = scmp.ge.s32.totalorder %s585_s12, 1  ;;  %s585_s12 = sphi %s608_s12, %s13_s12  }
   0x2   : > { %p137_p1 = scmp.lt.s32.totalorder %s585_s12, 3 }
   0x4   : > { %p138_p2 = pnand %p498_p0, %p137_p1 }
   0x5   : > { %v557_v0 = vld [vmem:[%s707_s1 + $0x48] sm:$0xff] (!%p138_p2)   ;;  %v587_v1 = vmov (!%p138_p2), 0   ;;  %v558_v2 = vld [vmem:[%s707_s1] sm:$0xff] (!%p138_p2)   ;;  %v559_v3 = vld [vmem:[%s707_s1 + $0x50] sm:$0xff] (!%p138_p2)   ;;  %p160_p3 = scmp.lt.s32.totalorder (!%p138_p2), %s494_s13, 1  ;;  %vm286_vm0 = vcmask (!%p138_p2), 130048  }
   0x6   : > { %141 = sbr.rel (%p138_p2) target bundleno = 263 (0x107), region = 32  ;;  %290 = vmatprep.subr.bf16.mxu0 (!%p138_p2), %v587_v1  ;;  %390 = vmatprep.subr.bf16.mxu1 (!%p138_p2), %v587_v1  ;;  %v560_v4 = vld [vmem:[%s707_s1 + $0x8] sm:$0xff] (!%p138_p2)   ;;  %v561_v5 = vld [vmem:[%s707_s1 + $0x58] sm:$0xff] (!%p138_p2)   ;;  %v562_v6 = vld [vmem:[%s707_s1 + $0x10] sm:$0xff] (!%p138_p2)  }
   0x7   : > { %291 = vmatpush1.bf16.msra.mxu0 (!%p138_p2), %v557_v0  ;;  %391 = vmatpush1.bf16.msra.mxu1 (!%p138_p2), %v558_v2  ;;  %v563_v7 = vld [vmem:[%s707_s1 + $0x60] sm:$0xff] (!%p138_p2)   ;;  %v564_v8 = vld [vmem:[%s707_s1 + $0x18] sm:$0xff] (!%p138_p2)   ;;  %v565_v9 = vld [vmem:[%s707_s1 + $0x68] sm:$0xff] (!%p138_p2)  }
   0x8   : > { %292 = vmatprep.subr.bf16.mxu0 (!%p138_p2), %v587_v1  ;;  %392 = vmatprep.subr.bf16.mxu1 (!%p138_p2), %v587_v1  ;;  %v566_v10 = vld [vmem:[%s707_s1 + $0x20] sm:$0xff] (!%p138_p2)   ;;  %v567_v11 = vld [vmem:[%s707_s1 + $0x70] sm:$0xff] (!%p138_p2)   ;;  %v568_v14 = vld [vmem:[%s707_s1 + $0x28] sm:$0xff] (!%p138_p2)  }
   0x9   : > { %v569_v20 = vld [vmem:[%s707_s1 + $0x78] sm:$0xff] (!%p138_p2)   ;;  %v570_v21 = vld [vmem:[%s707_s1 + $0x30] sm:$0xff] (!%p138_p2)   ;;  %v571_v25 = vld [vmem:[%s707_s1 + $0x80] sm:$0xff] (!%p138_p2)  }
   0xa   : > { %v572_v26 = vld [vmem:[%s707_s1 + $0x38] sm:$0xff] (!%p138_p2)   ;;  %v573_v29 = vld [vmem:[%s707_s1 + $0x88] sm:$0xff] (!%p138_p2)   ;;  %v574_v30 = vld [vmem:[%s707_s1 + $0x40] sm:$0xff] (!%p138_p2)  }
   0xb   : > { %293 = vmatpush1.bf16.msra.mxu0 (!%p138_p2), %v559_v3  ;;  %393 = vmatpush1.bf16.msra.mxu1 (!%p138_p2), %v560_v4  ;;  %v544_v35 = vld [vmem:[%s708_s2] ss:$0 sm:$0xff] (!%p138_p2) }
   0xc   : > { %294 = vmatprep.subr.bf16.mxu0 (!%p138_p2), %v587_v1  ;;  %394 = vmatprep.subr.bf16.mxu1 (!%p138_p2), %v587_v1 }
   0xd   : > { %s711_s13 = smov (!%p160_p3, %s494_s13), 1 }
   0xe   : > { %s547_s30 = sshll.u32 %s711_s13, 4  ;;  %s501_s4 = sshll.u32 %s711_s13, 2 }
   0xf   : > { %295 = vmatpush1.bf16.msra.mxu0 %v561_v5  ;;  %395 = vmatpush1.bf16.msra.mxu1 %v562_v6  ;;  %s164_s10 = scalar_lea.vmem %s706_s0, %s547_s30  ;;  %s168_s7 = scalar_lea.vmem %s709_s3, %s501_s4 }
  0x10   : > { %296 = vmatprep.subr.bf16.mxu0 %v587_v1  ;;  %396 = vmatprep.subr.bf16.mxu1 %v587_v1  ;;  %v170_v12 = vld [vmem:[%s164_s10] sm:$0xff]  ;;  %v171_v13 = vld [vmem:[%s164_s10 + $0x8] sm:$0x11] }
  0x11   : > { %v521_v15 = vcombine.high %v170_v12, %v171_v13  ;;  %v533_v16 = vcombine.high %v170_v12, %v170_v12  ;;  %v520_v17 = vcombine.low %v170_v12, %v171_v13  ;;  %v532_v32 = vcombine.low %v170_v12, %v170_v12 }
  0x13   : > { %297 = vmatpush1.bf16.msra.mxu0 %v563_v7  ;;  %397 = vmatpush1.bf16.msra.mxu1 %v564_v8  ;;  %v225_v18 = vshrl.u32 %v521_v15, 16  ;;  %v227_v19 = vshll.u32 %v521_v15, 16  ;;  %v220_v24 = vshll.u32 %v520_v17, 16  ;;  %v218_v27 = vshrl.u32 %v520_v17, 16 }
  0x14   : > { %298 = vmatprep.subr.bf16.mxu0 %v587_v1  ;;  %398 = vmatprep.subr.bf16.mxu1 %v587_v1 }
  0x15   : > { %543 = vmatprep.mubr.msk.bf16.mxu1 %vm286_vm0, %v533_v16  ;;  %v229_v22 = vrot.slane %v227_v19, 1  ;;  %v222_v28 = vrot.slane %v220_v24, 1 }
  0x17   : > { %299 = vmatpush1.bf16.msra.mxu0 %v565_v9  ;;  %399 = vmatpush1.bf16.msra.mxu1 %v566_v10  ;;  %v230_v23 = vor.u32 %v229_v22, %v225_v18  ;;  %v223_v31 = vor.u32 %v222_v28, %v218_v27 }
  0x18   : > { %300 = vmatprep.subr.bf16.mxu0 %v587_v1  ;;  %400 = vmatprep.subr.bf16.mxu1 %v587_v1 }
  0x19   : > { %531 = vmatprep.mubr.msk.bf16.mxu0 %vm286_vm0, %v230_v23 }
  0x1b   : > { %301 = vmatpush1.bf16.msra.mxu0 %v567_v11  ;;  %401 = vmatpush1.bf16.msra.mxu1 %v568_v14 }
  0x1c   : > { %302 = vmatprep.subr.bf16.mxu0 %v587_v1  ;;  %402 = vmatprep.subr.bf16.mxu1 %v587_v1 }
  0x1f   : > { %303 = vmatpush1.bf16.msra.mxu0 %v569_v20  ;;  %403 = vmatpush1.bf16.msra.mxu1 %v570_v21 }
  0x20   : > { %304 = vmatprep.subr.bf16.mxu0 %v587_v1  ;;  %404 = vmatprep.subr.bf16.mxu1 %v587_v1 }
  0x23   : > { %305 = vmatpush1.bf16.msra.mxu0 %v571_v25  ;;  %405 = vmatpush1.bf16.msra.mxu1 %v572_v26 }
  0x24   : > { %306 = vmatprep.subr.bf16.mxu0 %v587_v1  ;;  %406 = vmatprep.subr.bf16.mxu1 %v587_v1 }
  0x27   : > { %307 = vmatpush1.bf16.msra.mxu0 %v573_v29  ;;  %407 = vmatpush1.bf16.msra.mxu1 %v574_v30 }
  0x2a   : > { %323 = vmatmul.mubr.bf16.vlgmr.msra.gmra.mrb[0].mxu0 %v223_v31  ;;  %423 = vmatmul.mubr.bf16.vlgmr.msra.gmra.mrb[0].mxu1 %v532_v32 }
  0xfd   : > { %v324_v33 = vpop.f32.mrb[0].mxu0  ;;  %v424_v34 = vpop.f32.mrb[0].mxu1 }
  0xfe   : > { %v326_v36 = vpop.f32.mrb[1].mxu0  ;;  %v425_v37 = vadd.f32 %v424_v34, %v324_v33  ;;  %v426_v38 = vpop.f32.mrb[1].mxu1 }
  0xff   : > { %v327_v39 = vpop.f32.mrb[2].mxu0  ;;  %v427_v40 = vpop.f32.mrb[2].mxu1 }
 0x100   : > { %v328_v41 = vpop.f32.mrb[3].mxu0  ;;  %v437_v42 = vadd.f32 %v544_v35, %v425_v37  ;;  %v428_v43 = vpop.f32.mrb[3].mxu1 }
 0x102   : > { %v438_v44 = vmax.f32 %v437_v42, 0.0 }
 0x104   : > { %v439_v45 = vpack.c.bf16 %v438_v44, %v438_v44 }
 0x106   : > { %440 = vst [vmem:[%s168_s7] sm:$0xf] %v439_v45 }
 0x107 PF: > { %s13_s12 = sadd.s32 1, %s585_s12  }
 0x108   : > { %p10_p4 = scmp.ge.s32.totalorder %s13_s12, 4  }
 0x10a   :  { %12 = sbr.rel (!%p10_p4) target bundleno = 1 (0x1), region = 63 }

// kernel: encoder_decoder_forward.3
= control target key start
LH: loop header
LB: loop body
LE: loop exit
PB: predicated region body
PF: predicated region fallthrough
CT: control target
= control target key end

     0   :  { %s1531_s24 = smov 0   ;;  %s1771_s0 = inlined_call_operand.vmem [shape: bf16[2,5,320], index: 0, kind: input, shape index: {}]   ;;  %s1772_s1 = inlined_call_operand.vmem [shape: bf16[2,320,128], index: 1, kind: input, shape index: {}]   ;;  %s1773_s2 = inlined_call_operand.vmem [shape: f32[1,128], index: 2, kind: input, shape index: {}]   ;;  %s1774_s3 = inlined_call_operand.vmem [shape: f32[128,32], index: 3, kind: input, shape index: {}]   ;;  %s1775_s4 = inlined_call_operand.vmem [shape: f32[1,32], index: 4, kind: input, shape index: {}]   ;;  %s1776_s5 = inlined_call_operand.vmem [shape: f32[16,4], index: 5, kind: input, shape index: {}]   ;;  %s1777_s6 = inlined_call_operand.vmem [shape: f32[32,128], index: 6, kind: input, shape index: {}]   ;;  %s1778_s7 = inlined_call_operand.vmem [shape: f32[2,16,128], index: 7, kind: output, shape index: {}]  }
   0x1 LB: > { %s1135_s25 = sadd.s32 4294967295, %s1486_s24   ;;  %p1139_p0 = scmp.ge.s32.totalorder %s1486_s24, 1  ;;  %s1486_s24 = sphi %s1531_s24, %s17_s24  }
   0x2   : > { %p237_p1 = scmp.lt.s32.totalorder %s1486_s24, 3 }
   0x4   : > { %p238_p2 = pnand %p1139_p0, %p237_p1 }
   0x5   : > { %v1437_v0 = vld [vmem:[%s1772_s1 + $0xe0] sm:$0xff] (!%p238_p2)   ;;  %v1488_v1 = vmov (!%p238_p2), 0.0   ;;  %vm1489_vm0 = vmmov (!%p238_p2), 0   ;;  %p269_p3 = scmp.lt.s32.totalorder (!%p238_p2), %s1135_s25, 1  ;;  %v1440_v4 = vld [vmem:[%s1772_s1 + $0xe8] sm:$0xff] (!%p238_p2)   ;;  %v1443_v7 = vld [vmem:[%s1772_s1 + $0xf0] sm:$0xff] (!%p238_p2)  }
   0x6   : > { %241 = sbr.rel (%p238_p2) target bundleno = 923 (0x39b), region = 48  ;;  %1318 = vmatprep.subr.bf16.mxu1 (!%p238_p2), %v1488_v1  ;;  %v1438_v2 = vld [vmem:[%s1772_s1 + $0x120] sm:$0xff] (!%p238_p2)   ;;  %1238 = vmatprep.subr.bf16.mxu0 (!%p238_p2), %v1437_v0  ;;  %v1441_v5 = vld [vmem:[%s1772_s1 + $0x128] sm:$0xff] (!%p238_p2)   ;;  %v1444_v8 = vld [vmem:[%s1772_s1 + $0x130] sm:$0xff] (!%p238_p2)   ;;  %vm514_vm1 = vcmask (!%p238_p2), 523264   ;;  %v1490_v59 = vmov (!%p238_p2), 0.0|0.0  }
   0x7   : > { %v1439_v3 = vld [vmem:[%s1772_s1 + $0xa0] sm:$0xff] (!%p238_p2)   ;;  %1326 = vmatprep.mubr.msk.bf16.mxu1 (!%p238_p2), %vm1489_vm0, %v1488_v1  ;;  %1319 = vmatpush3.bf16.msra.mxu1 (!%p238_p2), %v1438_v2  ;;  %v1442_v6 = vld [vmem:[%s1772_s1 + $0xa8] sm:$0xff] (!%p238_p2)   ;;  %v1445_v9 = vld [vmem:[%s1772_s1 + $0xb0] sm:$0xff] (!%p238_p2)   ;;  %vm906_vm2 = vcmask (!%p238_p2), 31744   ;;  %vm913_vm3 = vcmask (!%p238_p2), 1043456   ;;  %vm996_vm4 = vcmask (!%p238_p2), 261120  }
   0x8   : > { %1239 = vmatpush3.bf16.msra.mxu0 (!%p238_p2), %v1439_v3  ;;  %1320 = vmatprep.subr.bf16.mxu1 (!%p238_p2), %v1488_v1  ;;  %v1446_v10 = vld [vmem:[%s1772_s1 + $0xf8] sm:$0xff] (!%p238_p2)   ;;  %v1450_v14 = vld [vmem:[%s1772_s1 + $0x40] sm:$0xff] (!%p238_p2)   ;;  %v1454_v21 = vld [vmem:[%s1772_s1 + $0x48] sm:$0xff] (!%p238_p2)  }
   0x9   : > { %1240 = vmatprep.subr.bf16.mxu0 (!%p238_p2), %v1440_v4  ;;  %v1447_v11 = vld [vmem:[%s1772_s1 + $0x138] sm:$0xff] (!%p238_p2)   ;;  %v1451_v17 = vld [vmem:[%s1772_s1 + $0x100] sm:$0xff] (!%p238_p2)   ;;  %v1455_v23 = vld [vmem:[%s1772_s1 + $0x108] sm:$0xff] (!%p238_p2)  }
   0xa   : > { %v1448_v12 = vld [vmem:[%s1772_s1 + $0xb8] sm:$0xff] (!%p238_p2)   ;;  %v1452_v18 = vld [vmem:[%s1772_s1] sm:$0xff] (!%p238_p2)   ;;  %v1456_v24 = vld [vmem:[%s1772_s1 + $0x8] sm:$0xff] (!%p238_p2)  }
   0xb   : > { %1321 = vmatpush3.bf16.msra.mxu1 (!%p238_p2), %v1441_v5  ;;  %v1453_v20 = vld [vmem:[%s1772_s1 + $0xc0] sm:$0xff] (!%p238_p2)   ;;  %v1457_v25 = vld [vmem:[%s1772_s1 + $0xc8] sm:$0xff] (!%p238_p2)   ;;  %v1458_v26 = vld [vmem:[%s1772_s1 + $0x50] sm:$0xff] (!%p238_p2)  }
   0xc   : > { %1241 = vmatpush3.bf16.msra.mxu0 (!%p238_p2), %v1442_v6  ;;  %1322 = vmatprep.subr.bf16.mxu1 (!%p238_p2), %v1488_v1  ;;  %v1459_v27 = vld [vmem:[%s1772_s1 + $0x110] sm:$0xff] (!%p238_p2)   ;;  %v1462_v30 = vld [vmem:[%s1772_s1 + $0x58] sm:$0xff] (!%p238_p2)   ;;  %v1468_v37 = vld [vmem:[%s1772_s1 + $0x60] sm:$0xff] (!%p238_p2)  }
   0xd   : > { %s1780_s25 = smov (!%p269_p3, %s1135_s25), 1  ;;  %1242 = vmatprep.subr.bf16.mxu0 %v1443_v7  ;;  %v1460_v28 = vld [vmem:[%s1772_s1 + $0x10] sm:$0xff]   ;;  %v1463_v31 = vld [vmem:[%s1772_s1 + $0x118] sm:$0xff]   ;;  %v1469_v44 = vld [vmem:[%s1772_s1 + $0x20] sm:$0xff]  }
   0xe   : > { %s1425_s17 = smul.u32 12, %s1780_s25  ;;  %v1461_v29 = vld [vmem:[%s1772_s1 + $0xd0] sm:$0xff]   ;;  %v1465_v32 = vld [vmem:[%s1772_s1 + $0xd8] sm:$0xff]   ;;  %v1471_v45 = vld [vmem:[%s1772_s1 + $0x68] sm:$0xff]   ;;  %s1237_s10 = sshll.u32 %s1780_s25, 4 }
   0xf   : > { %1323 = vmatpush3.bf16.msra.mxu1 %v1444_v8  ;;  %v1464_v34 = vld [vmem:[%s1772_s1 + $0x18] sm:$0xff]   ;;  %v1470_v48 = vld [vmem:[%s1772_s1 + $0x80] sm:$0xff]   ;;  %v1472_v49 = vld [vmem:[%s1772_s1 + $0x28] sm:$0xff]   ;;  %s278_s13 = scalar_lea.vmem %s1778_s7, %s1237_s10 }
  0x10   : > { %s1580_s28 = scalar_lea.vmem %s1771_s0, %s1425_s17  ;;  %1243 = vmatpush3.bf16.msra.mxu0 %v1445_v9  ;;  %1324 = vmatprep.subr.bf16.mxu1 %v1488_v1  ;;  %v1474_v50 = vld [vmem:[%s1772_s1 + $0x70] sm:$0xff]   ;;  %v1473_v51 = vld [vmem:[%s1772_s1 + $0x88] sm:$0xff]   ;;  %v1477_v53 = vld [vmem:[%s1772_s1 + $0x78] sm:$0xff]  }
  0x11   : > { %v1590_v13 = vld [vmem:[%s1580_s28 + $0x8] ss:$0 sps:$4 sm:$0x77]   ;;  %1244 = vmatprep.subr.bf16.mxu0 %v1446_v10  ;;  %v280_v33 = vld [vmem:[%s1580_s28] sm:$0x77]  ;;  %v1475_v52 = vld [vmem:[%s1772_s1 + $0x30] sm:$0xff]  }
  0x12   : > { %v386_v15 = vshrl.u32 %v1590_v13, 16  ;;  %v388_v16 = vshll.u32 %v1590_v13, 16  ;;  %v1183_v35 = vcombine.low %v280_v33, %v280_v33  ;;  %v1184_v36 = vcombine.high %v280_v33, %v280_v33  ;;  %v1476_v54 = vld [vmem:[%s1772_s1 + $0x90] sm:$0xff]   ;;  %v1478_v55 = vld [vmem:[%s1772_s1 + $0x38] sm:$0xff]   ;;  %v811_v57 = vld [vmem:[%s1774_s3] sm:$0xff] }
  0x13   : > { %1325 = vmatpush3.bf16.msra.mxu1 %v1447_v11  ;;  %v1479_v56 = vld [vmem:[%s1772_s1 + $0x98] sm:$0xff]   ;;  %v812_v58 = vld [vmem:[%s1774_s3 + $0x8] sm:$0xff]  ;;  %v813_v61 = vld [vmem:[%s1774_s3 + $0x10] sm:$0xff] }
  0x14   : > { %1245 = vmatpush3.bf16.msra.mxu0 %v1448_v12  ;;  %v390_v19 = vrot.slane %v388_v16, 1  ;;  %1265 = vmatprep.subr.bf16.mxu1 %v1450_v14  ;;  %v379_v38 = vshrl.u32 %v1184_v36, 16  ;;  %v381_v39 = vshll.u32 %v1184_v36, 16  ;;  %v372_v40 = vshrl.u32 %v1183_v35, 16  ;;  %v814_v62 = vld [vmem:[%s1774_s3 + $0x18] sm:$0xff]  ;;  %v815_v0 = vld [vmem:[%s1774_s3 + $0x20] sm:$0xff] }
  0x15   : > { %1246 = vmatprep.subr.bf16.mxu0 %v1451_v17  ;;  %v374_v41 = vshll.u32 %v1183_v35, 16  ;;  %v1394_v60 = vpack.c.bf16 %v812_v58, %v811_v57  ;;  %v1397_v63 = vpack.c.bf16 %v814_v62, %v813_v61  ;;  %v817_v3 = vld [vmem:[%s1774_s3 + $0x30] sm:$0xff]  ;;  %v818_v4 = vld [vmem:[%s1774_s3 + $0x38] sm:$0xff]  ;;  %v819_v6 = vld [vmem:[%s1774_s3 + $0x40] sm:$0xff] }
  0x16   : > { %v391_v22 = vor.u32 %v390_v19, %v386_v15  ;;  %v383_v42 = vrot.slane %v381_v39, 1  ;;  %v1403_v5 = vpack.c.bf16 %v818_v4, %v817_v3  ;;  %v820_v7 = vld [vmem:[%s1774_s3 + $0x48] sm:$0xff]  ;;  %v821_v9 = vld [vmem:[%s1774_s3 + $0x50] sm:$0xff]  ;;  %v822_v10 = vld [vmem:[%s1774_s3 + $0x58] sm:$0xff] }
  0x17   : > { %v376_v43 = vrot.slane %v374_v41, 1  ;;  %v1406_v8 = vpack.c.bf16 %v820_v7, %v819_v6  ;;  %v1409_v11 = vpack.c.bf16 %v822_v10, %v821_v9  ;;  %v823_v12 = vld [vmem:[%s1774_s3 + $0x60] sm:$0xff]  ;;  %v825_v15 = vld [vmem:[%s1774_s3 + $0x70] sm:$0xff]  ;;  %v826_v16 = vld [vmem:[%s1774_s3 + $0x78] sm:$0xff] }
  0x18   : > { %1327 = vmatmul.mubr.msk.bf16.vlgmr.msra.gmra.mrb[0].mxu1 %vm514_vm1, %v391_v22  ;;  %1247 = vmatpush3.bf16.msra.mxu0 %v1453_v20  ;;  %v384_v46 = vor.u32 %v383_v42, %v379_v38  ;;  %v1415_v17 = vpack.c.bf16 %v826_v16, %v825_v15  ;;  %v904_v42 = vld [vmem:[%s1776_s5] sm:$0xff] }
  0x19   : > { %1266 = vmatpush3.bf16.msra.mxu1 %v1452_v18  ;;  %1248 = vmatprep.subr.bf16.mxu0 %v1455_v23  ;;  %v377_v47 = vor.u32 %v376_v43, %v372_v40  ;;  %v1229_v43 = vld [vmem:[%s1775_s4] ss:$0 sm:$0xff] }
  0x1a   : > { %1267 = vmatprep.subr.bf16.mxu1 %v1454_v21  ;;  %754 = vmatprep.mubr.bf16.mxu1 %v1184_v36 }
  0x1b   : > { %550 = vmatprep.mubr.bf16.mxu0 %v384_v46 }
  0x1c   : > { %1249 = vmatpush3.bf16.msra.mxu0 %v1457_v25 }
  0x1d   : > { %1268 = vmatpush3.bf16.msra.mxu1 %v1456_v24  ;;  %1250 = vmatprep.subr.bf16.mxu0 %v1459_v27 }
  0x1e   : > { %1269 = vmatprep.subr.bf16.mxu1 %v1458_v26 }
  0x20   : > { %1251 = vmatpush3.bf16.msra.mxu0 %v1461_v29 }
  0x21   : > { %1270 = vmatpush3.bf16.msra.mxu1 %v1460_v28  ;;  %1252 = vmatprep.subr.bf16.mxu0 %v1463_v31 }
  0x22   : > { %1271 = vmatprep.subr.bf16.mxu1 %v1462_v30 }
  0x24   : > { %1253 = vmatpush3.bf16.msra.mxu0 %v1465_v32 }
  0x25   : > { %1272 = vmatpush3.bf16.msra.mxu1 %v1464_v34  ;;  %1330 = vmatprep.subr.bf16.mxu0 %v1488_v1 }
  0x26   : > { %1273 = vmatprep.subr.bf16.mxu1 %v1468_v37  ;;  %v1228_v37 = vld [vmem:[%s1773_s2] ss:$0 sm:$0xff] }
  0x27   : > { %551 = vmatmul.mubr.bf16.vlgmr.msra.gmra.mrb[0].mxu0 %v377_v47  ;;  %v994_v47 = vld [vmem:[%s1777_s6 + $0x10] sm:$0xff] }
  0x28   : > { %1331 = vmatpush3.bf16.msra.mxu0 %v1470_v48  ;;  %1338 = vmatprep.mubr.msk.bf16.mxu0 %vm1489_vm0, %v1488_v1  ;;  %v995_v48 = vld [vmem:[%s1777_s6 + $0x18] sm:$0xff] }
  0x29   : > { %1274 = vmatpush3.bf16.msra.mxu1 %v1469_v44  ;;  %1332 = vmatprep.subr.bf16.mxu0 %v1488_v1  ;;  %v992_v44 = vld [vmem:[%s1777_s6] sm:$0xff] }
  0x2a   : > { %1275 = vmatprep.subr.bf16.mxu1 %v1471_v45  ;;  %v993_v45 = vld [vmem:[%s1777_s6 + $0x8] sm:$0xff] }
  0x2c   : > { %1333 = vmatpush3.bf16.msra.mxu0 %v1473_v51  ;;  %v1417_v51 = vpack.c.bf16 %v993_v45, %v992_v44 }
  0x2d   : > { %1276 = vmatpush3.bf16.msra.mxu1 %v1472_v49  ;;  %1334 = vmatprep.subr.bf16.mxu0 %v1488_v1 }
  0x2e   : > { %1277 = vmatprep.subr.bf16.mxu1 %v1474_v50 }
  0x30   : > { %1335 = vmatpush3.bf16.msra.mxu0 %v1476_v54 }
  0x31   : > { %1278 = vmatpush3.bf16.msra.mxu1 %v1475_v52  ;;  %1336 = vmatprep.subr.bf16.mxu0 %v1488_v1  ;;  %v905_v52 = vld [vmem:[%s1776_s5 + $0x8] sm:$0xff] }
  0x32   : > { %1279 = vmatprep.subr.bf16.mxu1 %v1477_v53  ;;  %v1421_v53 = vpack.c.bf16 %v995_v48, %v994_v47 }
  0x34   : > { %1337 = vmatpush3.bf16.msra.mxu0 %v1479_v56 }
  0x35   : > { %1280 = vmatpush3.bf16.msra.mxu1 %v1478_v55  ;;  %1393 = vmatprep.subr.bf16.mxu0 %v1490_v59 }
  0x37   : > { %1339 = vmatmul.mubr.msk.bf16.vlgmr.msra.gmra.mrb[4].mxu0 %vm514_vm1, %v1590_v13  ;;  %v824_v13 = vld [vmem:[%s1774_s3 + $0x68] sm:$0xff] }
  0x38   : > { %755 = vmatmul.mubr.bf16.vlgmr.msra.gmra.mrb[4].mxu1 %v1183_v35  ;;  %1374 = vmatprep.mubr.msk.f32.mxu0 %vm1489_vm0, %v1488_v1  ;;  %v816_v1 = vld [vmem:[%s1774_s3 + $0x28] sm:$0xff]  ;;  %v1412_v14 = vpack.c.bf16 %v824_v13, %v823_v12 }
  0x39   : > { %1395 = vmatpush3.bf16.msra.mxu0 %v1394_v60  ;;  %v1400_v2 = vpack.c.bf16 %v816_v1, %v815_v0  ;;  %1379 = vmatprep.mubr.msk.f32.mxu1 %vm906_vm2, %v904_v42 }
  0x3a   : > { %1396 = vmatprep.subr.bf16.mxu0 %v1490_v59 }
  0x3d   : > { %1398 = vmatpush3.bf16.msra.mxu0 %v1397_v63 }
  0x3e   : > { %1399 = vmatprep.subr.bf16.mxu0 %v1490_v59 }
  0x41   : > { %1401 = vmatpush3.bf16.msra.mxu0 %v1400_v2 }
  0x42   : > { %1402 = vmatprep.subr.bf16.mxu0 %v1490_v59 }
  0x45   : > { %1404 = vmatpush3.bf16.msra.mxu0 %v1403_v5 }
  0x46   : > { %1405 = vmatprep.subr.bf16.mxu0 %v1490_v59 }
  0x49   : > { %1407 = vmatpush3.bf16.msra.mxu0 %v1406_v8 }
  0x4a   : > { %1408 = vmatprep.subr.bf16.mxu0 %v1490_v59 }
  0x4d   : > { %1410 = vmatpush3.bf16.msra.mxu0 %v1409_v11 }
  0x4e   : > { %1411 = vmatprep.subr.bf16.mxu0 %v1490_v59 }
  0x51   : > { %1413 = vmatpush3.bf16.msra.mxu0 %v1412_v14 }
  0x52   : > { %1414 = vmatprep.subr.bf16.mxu0 %v1490_v59 }
  0x55   : > { %1416 = vmatpush3.bf16.msra.mxu0 %v1415_v17 }
  0xeb   : > { %v592_v18 = vpop.f32.mrb[0].mxu1 }
  0xec   : > { %v1328_v19 = vpop.f32.mrb[1].mxu1 }
  0xed   : > { %v595_v20 = vpop.f32.mrb[2].mxu1 }
  0xee   : > { %v1329_v21 = vpop.f32.mrb[3].mxu1 }
  0xfa   : > { %v1254_v22 = vpop.f32.mrb[0].mxu0 }
  0xfb   : > { %v1255_v23 = vpop.f32.mrb[1].mxu0 }
  0xfc   : > { %v1256_v24 = vadd.f32 %v1255_v23, %v1254_v22  ;;  %v1257_v25 = vpop.f32.mrb[2].mxu0 }
  0xfd   : > { %v1258_v26 = vpop.f32.mrb[3].mxu0 }
  0xfe   : > { %v593_v27 = vadd.f32 %v1256_v24, %v592_v18 }
 0x10a   : > { %v796_v32 = vpop.f32.mrb[4].mxu0 }
 0x10b   : > { %v1281_v28 = vpop.f32.mrb[4].mxu1  ;;  %v1340_v34 = vpop.f32.mrb[5].mxu0 }
 0x10c   : > { %v1282_v29 = vpop.f32.mrb[5].mxu1  ;;  %v799_v36 = vpop.f32.mrb[6].mxu0 }
 0x10d   : > { %v1283_v30 = vadd.f32 %v1282_v29, %v1281_v28  ;;  %v1284_v31 = vpop.f32.mrb[6].mxu1  ;;  %v1341_v38 = vpop.f32.mrb[7].mxu0 }
 0x10e   : > { %v1285_v33 = vpop.f32.mrb[7].mxu1 }
 0x10f   : > { %v757_v35 = vadd.f32 %v1283_v30, %v593_v27 }
 0x111   : > { %v797_v39 = vadd.f32 %v796_v32, %v757_v35 }
 0x113   : > { %v809_v40 = vadd.f32 %v1228_v37, %v797_v39 }
 0x115   : > { %v810_v41 = vmax.f32 %v809_v40, 0.0 }
 0x117   : > { %1375 = vmatmul.mubr.f32.vlgmr.msra.gmra.mrb[8].mxu0 %v810_v41 }
 0x1ea   : > { %v900_v46 = vpop.f32.mrb[8].mxu0 }
 0x1eb   : > { %v901_v49 = vadd.f32 %v1229_v43, %v900_v46  ;;  %v1376_v50 = vpop.f32.mrb[9].mxu0 }
 0x1ed   : > { %1377 = vmatprep.subr.msk.mxu1 %vm913_vm3, %v901_v49 }
 0x1ee   : > { %1378 = vmatpush3.msk.msra.mxu1 %vm913_vm3, %v901_v49 }
 0x1ef   : > { %1380 = vmatmul.mubr.msk.f32.vlgmr.msra.gmra.mrb[8].mxu1 %vm906_vm2, %v905_v52  ;;  %1418 = vmatprep.subr.bf16.mxu1 %v1417_v51 }
 0x1f0   : > { %1420 = vmatpush3.bf16.msra.mxu1 %v1417_v51 }
 0x1f1   : > { %1422 = vmatprep.subr.bf16.mxu1 %v1421_v53 }
 0x1f4   : > { %1424 = vmatpush3.bf16.msra.mxu1 %v1421_v53 }
 0x2c2   : > { %v1381_v54 = vpop.f32.mrb[8].mxu1 }
 0x2c3   : > { %v983_v55 = vpop.f32.mrb[9].mxu1 }
 0x2c4   : > { %1390 = vmatprep.mubr.msk.f32.mxu1 %vm996_vm4, %v983_v55 }
 0x2c5   : > { %1391 = vmatmul.mubr.msk.f32.vlgmr.msra.gmra.mrb[10].mxu1 %vm996_vm4, %v1381_v54 }
 0x398   : > { %v1392_v56 = vpop.f32.mrb[10].mxu1 }
 0x399   : > { %1079 = vst [vmem:[%s278_s13 + $0x8] sm:$0xff] %v1392_v56  ;;  %v1069_v57 = vpop.f32.mrb[11].mxu1 }
 0x39a   : > { %1078 = vst [vmem:[%s278_s13] sm:$0xff] %v1069_v57 }
 0x39b PF: > { %s17_s24 = sadd.s32 1, %s1486_s24  }
 0x39c   : > { %p14_p4 = scmp.ge.s32.totalorder %s17_s24, 4  }
 0x39e   :  { %16 = sbr.rel (!%p14_p4) target bundleno = 1 (0x1), region = 79 }

</bundles_post_ra>
